<compile_context>
chip_gen: v7x
topology: tpu7x:2x2x1
jax: 0.10.0
libtpu: 0.0.40
codegen_flags: <defaults>
</compile_context>

<pallas_src>
import functools

import jax
import jax.numpy as jnp
from jax.experimental import pallas as pl
from jax.experimental.pallas import tpu as pltpu


def _dice_sums_kernel(p_ref, t_ref, inter_ref, sump_ref, sumt_ref, *,
                      hw, tile, slab, n_half, apply_sigmoid, needs_mask,
                      unroll):
    h = pl.program_id(0)
    s = pl.program_id(1)

    # Initialize the resident output accumulators on the first spatial step.
    @pl.when(s == 0)
    def _():
        inter_ref[...] = jnp.zeros_like(inter_ref)
        sump_ref[...] = jnp.zeros_like(sump_ref)
        sumt_ref[...] = jnp.zeros_like(sumt_ref)

    n_slabs = tile // slab
    block_start = (h * n_half + s) * tile   # first element covered by this tile

    def make_body(masked):
        def body(j, carry):
            inter, sump, sumt = carry
            lo = j * slab
            if not isinstance(lo, int):
                lo = pl.multiple_of(lo, slab)
            # Slab-sized loads straight from the ref: keeps vreg pressure low.
            p = p_ref[:, pl.ds(lo, slab)].astype(jnp.float32)
            t = t_ref[:, pl.ds(lo, slab)].astype(jnp.float32)
            if apply_sigmoid:
                p = jax.nn.sigmoid(p)        # EUP slot; free in a mem-bound loop
            if masked:
                # Select (not multiply!) AFTER the sigmoid so padded lanes
                # (possibly NaN/Inf garbage) contribute exactly zero.
                lane = jax.lax.broadcasted_iota(jnp.int32, p.shape, 1)
                gidx = block_start + lo + lane
                valid = gidx < hw
                zero = jnp.zeros((), jnp.float32)
                p = jnp.where(valid, p, zero)
                t = jnp.where(valid, t, zero)
            return (inter + p * t, sump + p, sumt + t)
        return body

    def accumulate(masked):
        body = make_body(masked)
        carry = (inter_ref[0], sump_ref[0], sumt_ref[0])
        if n_slabs == 1:
            carry = body(0, carry)
        else:
            carry = jax.lax.fori_loop(0, n_slabs, body, carry,
                                      unroll=min(unroll, n_slabs))
        inter_ref[0] = carry[0]
        sump_ref[0] = carry[1]
        sumt_ref[0] = carry[2]

    if not needs_mask:
        accumulate(masked=False)
    else:
        # Only the single true tail tile pays for masking.
        is_tail = block_start + tile > hw

        @pl.when(jnp.logical_not(is_tail))
        def _():
            accumulate(masked=False)

        @pl.when(is_tail)
        def _():
            accumulate(masked=True)


def _has_two_tensorcores():
    """Best-effort detection of 2-TensorCore chips (v7x). Defaults to False."""
    try:
        kind = jax.devices()[0].device_kind.lower()
    except Exception:
        return False
    return "v7" in kind


def dice_score(predict, target, *, num_classes=4, smooth=1e-5, weight=None,
               ignore_index=None, is_sigmoid=True, max_spatial_tile=None,
               slab_lanes=512, unroll=8):
    """Pallas equivalent of DiceScore.forward -> float32 per-class dice scores."""
    assert predict.shape[0] == target.shape[0], "batch sizes don't match"
    B, C = predict.shape[0], predict.shape[1]
    assert C == num_classes
    hw = 1
    for d in predict.shape[2:]:
        hw *= int(d)
    R = B * C

    # Free, contiguous views (no extra HBM pass).
    p2 = predict.reshape(R, hw)
    t2 = target.reshape(R, hw)

    # --- VMEM-budgeted spatial tile sizing ------------------------------------
    itemsize = max(predict.dtype.itemsize, target.dtype.itemsize)
    try:
        vmem_cap = int(pltpu.get_tpu_info().vmem_capacity_bytes)
    except Exception:
        vmem_cap = 64 * 1024 * 1024      # conservative (v7x per-TC)
    # 2 inputs x 2 pipeline buffers must fit the budget; keep 3/4 of VMEM free
    # for outputs / internal scratch / the other TensorCore on v7x.
    input_budget = min(24 << 20, vmem_cap // 4)

    fit = input_budget // (4 * R * itemsize)
    max_tile = max(128, (int(fit) // 128) * 128)
    if max_spatial_tile is not None:                      # explicit override
        max_tile = max(128, min(max_tile, (int(max_spatial_tile) // 128) * 128))

    if hw % 128 == 0:
        tile = min(max_tile, hw)
    elif hw > 128:
        tile = min(max_tile, (hw // 128) * 128)           # multiple of 128, <= hw
    else:
        tile = hw                                         # tiny spatial dim

    # Slab width for the in-kernel sweep (multiple of 128 that divides tile).
    slab = tile
    for cand in (512, 256, 128):
        if cand <= slab_lanes and tile % cand == 0:
            slab = cand
            break

    n_t = (hw + tile - 1) // tile                         # real spatial tiles
    # 2-way split only on 2-TC chips and only when it is exactly even
    # (no padded clamp tiles, no wasted HBM re-reads).
    two_tc = _has_two_tensorcores()
    n_halves = 2 if (two_tc and n_t >= 2 and n_t % 2 == 0) else 1
    n_half = n_t // n_halves
    needs_mask = (hw % tile != 0)

    def in_map(h, s):
        return (0, h * n_half + s)

    def out_map(h, s):
        return (h, 0, 0)

    kernel = functools.partial(
        _dice_sums_kernel, hw=hw, tile=tile, slab=slab, n_half=n_half,
        apply_sigmoid=is_sigmoid, needs_mask=needs_mask, unroll=unroll)

    # Explicit VMEM limit so scoped defaults never cap the tile size.
    in_bytes = 4 * R * tile * itemsize            # 2 inputs x 2 buffers
    out_bytes = 3 * 2 * R * slab * 4              # 3 f32 outputs x 2 buffers
    vmem_limit = int(max(16 << 20,
                         min(vmem_cap // 2, in_bytes + out_bytes + (8 << 20))))

    out_sds = jax.ShapeDtypeStruct((n_halves, R, slab), jnp.float32)
    inter_p, sump_p, sumt_p = pl.pallas_call(
        kernel,
        out_shape=(out_sds, out_sds, out_sds),
        grid_spec=pltpu.PrefetchScalarGridSpec(
            num_scalar_prefetch=0,
            grid=(n_halves, n_half),
            in_specs=[
                pl.BlockSpec((R, tile), in_map),
                pl.BlockSpec((R, tile), in_map),
            ],
            out_specs=(
                pl.BlockSpec((1, R, slab), out_map),
                pl.BlockSpec((1, R, slab), out_map),
                pl.BlockSpec((1, R, slab), out_map),
            ),
        ),
        compiler_params=pltpu.CompilerParams(
            dimension_semantics=("parallel", "arbitrary"),
            vmem_limit_bytes=vmem_limit),
    )(p2, t2)

    # Tiny epilogue in plain JAX: cross-lane + cross-half reduce, dice, batch mean.
    inter = jnp.sum(inter_p, axis=(0, 2)).reshape(B, C)
    sump = jnp.sum(sump_p, axis=(0, 2)).reshape(B, C)
    sumt = jnp.sum(sumt_p, axis=(0, 2)).reshape(B, C)
    dice = 2.0 * inter / (sump + sumt + smooth)      # (B, C) per-sample dice
    scores = jnp.mean(dice, axis=0)                  # (C,)  batch mean per class

    if weight is not None:
        scores = scores * jnp.asarray(weight, jnp.float32)
    if ignore_index is not None:
        scores = jnp.concatenate(
            [scores[:ignore_index], scores[ignore_index + 1:]])
    return scores


def _dice_score_ref(predict, target, *, num_classes=4, smooth=1e-5,
                    is_sigmoid=True):
    """Pure-JAX reference matching the PyTorch forward."""
    p = jax.nn.sigmoid(predict) if is_sigmoid else predict
    B = p.shape[0]
    scores = []
    for i in range(num_classes):
        pi = p[:, i].reshape(B, -1)
        ti = target[:, i].reshape(B, -1)
        inter = jnp.sum(pi * ti, axis=1)
        union = jnp.sum(pi, axis=1) + jnp.sum(ti, axis=1)
        scores.append(jnp.mean(2.0 * inter / (union + smooth)))
    return jnp.stack(scores).astype(jnp.float32)


if __name__ == "__main__":
    key = jax.random.PRNGKey(0)

    # Test 1: canonical small NCHW case (single tile, single slab).
    k1, k2 = jax.random.split(jax.random.fold_in(key, 0))
    B, C, H, W = 2, 4, 16, 16
    predict = jax.random.normal(k1, (B, C, H, W), dtype=jnp.float32)
    target = (jax.random.uniform(k2, (B, C, H, W)) < 0.5).astype(jnp.float32)
    out = jax.block_until_ready(dice_score(predict, target, num_classes=C))
    ref = _dice_score_ref(predict, target, num_classes=C)
    assert out.shape == (C,)
    assert jnp.allclose(out, ref, atol=1e-5, rtol=1e-4), (out, ref)

    # Test 2: ragged spatial size (exercises pl.when-gated tail-tile masking).
    k1, k2 = jax.random.split(jax.random.fold_in(key, 1))
    B, C, H, W = 2, 3, 10, 14
    predict = jax.random.normal(k1, (B, C, H, W), dtype=jnp.float32)
    target = (jax.random.uniform(k2, (B, C, H, W)) < 0.5).astype(jnp.float32)
    out = jax.block_until_ready(dice_score(predict, target, num_classes=C))
    ref = _dice_score_ref(predict, target, num_classes=C)
    assert jnp.allclose(out, ref, atol=1e-5, rtol=1e-4), (out, ref)

    # Test 3: multi-tile spatial sweep (forced small tile -> several grid steps).
    k1, k2 = jax.random.split(jax.random.fold_in(key, 2))
    B, C, H, W = 2, 4, 64, 64
    predict = jax.random.normal(k1, (B, C, H, W), dtype=jnp.float32)
    target = (jax.random.uniform(k2, (B, C, H, W)) < 0.5).astype(jnp.float32)
    out = jax.block_until_ready(
        dice_score(predict, target, num_classes=C, max_spatial_tile=512))
    ref = _dice_score_ref(predict, target, num_classes=C)
    assert jnp.allclose(out, ref, atol=1e-5, rtol=1e-4), (out, ref)

    # Test 4: single big tile, multi-slab fori_loop sweep inside the kernel.
    out = jax.block_until_ready(dice_score(predict, target, num_classes=C))
    assert jnp.allclose(out, ref, atol=1e-5, rtol=1e-4), (out, ref)

    # Test 5: ragged + multi-slab tail tile (masked fori_loop path).
    k1, k2 = jax.random.split(jax.random.fold_in(key, 3))
    B, C, H, W = 2, 3, 30, 30
    predict = jax.random.normal(k1, (B, C, H, W), dtype=jnp.float32)
    target = (jax.random.uniform(k2, (B, C, H, W)) < 0.5).astype(jnp.float32)
    out = jax.block_until_ready(dice_score(predict, target, num_classes=C))
    ref = _dice_score_ref(predict, target, num_classes=C)
    assert jnp.allclose(out, ref, atol=1e-5, rtol=1e-4), (out, ref)

    print("KERNEL_OK")
</pallas_src>

<mosaic_0001>
module attributes {stable_mosaic.version = 11 : i64} {
  func.func @_dice_sums_kernel(%arg0: i32, %arg1: i32, %arg2: memref<8x256xf32, #tpu.memory_space<vmem>>, %arg3: memref<8x256xf32, #tpu.memory_space<vmem>>, %arg4: memref<1x8x256xf32, #tpu.memory_space<vmem>>, %arg5: memref<1x8x256xf32, #tpu.memory_space<vmem>>, %arg6: memref<1x8x256xf32, #tpu.memory_space<vmem>>) attributes {dimension_semantics = [#tpu.dimension_semantics<parallel>, #tpu.dimension_semantics<arbitrary>], iteration_bounds = array<i64: 1, 1>, scalar_prefetch = 0 : i64, scratch_operands = 0 : i64, tpu.core_type = #tpu.core_type<tc>, window_params = [{transform_indices = @transform_0, window_bounds = array<i64: 8, 256>}, {transform_indices = @transform_1, window_bounds = array<i64: 8, 256>}, {transform_indices = @transform_2, window_bounds = array<i64: 1, 8, 256>}, {transform_indices = @transform_3, window_bounds = array<i64: 1, 8, 256>}, {transform_indices = @transform_4, window_bounds = array<i64: 1, 8, 256>}]} {
    %c0_i32 = arith.constant 0 : i32
    %0 = arith.cmpi eq, %arg1, %c0_i32 : i32
    %1 = arith.extui %0 : i1 to i32
    %c0_i32_0 = arith.constant 0 : i32
    %2 = arith.cmpi ne, %1, %c0_i32_0 : i32
    scf.if %2 {
      %cst_22 = arith.constant 0.000000e+00 : f32
      %29 = vector.broadcast %cst_22 : f32 to vector<1x8x256xf32>
      %c0_23 = arith.constant 0 : index
      %c0_24 = arith.constant 0 : index
      %c0_25 = arith.constant 0 : index
      %30 = vector.load %arg4[%c0_23, %c0_24, %c0_25] : memref<1x8x256xf32, #tpu.memory_space<vmem>>, vector<1x8x256xf32>
      tpu.vector_store %arg4[%c0_23, %c0_24, %c0_25], %29 {strides = array<i32>} : memref<1x8x256xf32, #tpu.memory_space<vmem>>, vector<1x8x256xf32>,
      %cst_26 = arith.constant 0.000000e+00 : f32
      %31 = vector.broadcast %cst_26 : f32 to vector<1x8x256xf32>
      %c0_27 = arith.constant 0 : index
      %c0_28 = arith.constant 0 : index
      %c0_29 = arith.constant 0 : index
      %32 = vector.load %arg5[%c0_27, %c0_28, %c0_29] : memref<1x8x256xf32, #tpu.memory_space<vmem>>, vector<1x8x256xf32>
      tpu.vector_store %arg5[%c0_27, %c0_28, %c0_29], %31 {strides = array<i32>} : memref<1x8x256xf32, #tpu.memory_space<vmem>>, vector<1x8x256xf32>,
      %cst_30 = arith.constant 0.000000e+00 : f32
      %33 = vector.broadcast %cst_30 : f32 to vector<1x8x256xf32>
      %c0_31 = arith.constant 0 : index
      %c0_32 = arith.constant 0 : index
      %c0_33 = arith.constant 0 : index
      %34 = vector.load %arg6[%c0_31, %c0_32, %c0_33] : memref<1x8x256xf32, #tpu.memory_space<vmem>>, vector<1x8x256xf32>
      tpu.vector_store %arg6[%c0_31, %c0_32, %c0_33], %33 {strides = array<i32>} : memref<1x8x256xf32, #tpu.memory_space<vmem>>, vector<1x8x256xf32>,
    } else {
    }
    %c0 = arith.constant 0 : index
    %c0_1 = arith.constant 0 : index
    %c0_2 = arith.constant 0 : index
    %3 = vector.load %arg4[%c0, %c0_1, %c0_2] : memref<1x8x256xf32, #tpu.memory_space<vmem>>, vector<1x8x256xf32>
    %4 = vector.shape_cast %3 : vector<1x8x256xf32> to vector<8x256xf32>
    %c0_3 = arith.constant 0 : index
    %c0_4 = arith.constant 0 : index
    %c0_5 = arith.constant 0 : index
    %5 = vector.load %arg5[%c0_3, %c0_4, %c0_5] : memref<1x8x256xf32, #tpu.memory_space<vmem>>, vector<1x8x256xf32>
    %6 = vector.shape_cast %5 : vector<1x8x256xf32> to vector<8x256xf32>
    %c0_6 = arith.constant 0 : index
    %c0_7 = arith.constant 0 : index
    %c0_8 = arith.constant 0 : index
    %7 = vector.load %arg6[%c0_6, %c0_7, %c0_8] : memref<1x8x256xf32, #tpu.memory_space<vmem>>, vector<1x8x256xf32>
    %8 = vector.shape_cast %7 : vector<1x8x256xf32> to vector<8x256xf32>
    %c0_9 = arith.constant 0 : index
    %c0_10 = arith.constant 0 : index
    %9 = vector.load %arg2[%c0_9, %c0_10] : memref<8x256xf32, #tpu.memory_space<vmem>>, vector<8x256xf32>
    %c0_11 = arith.constant 0 : index
    %c0_12 = arith.constant 0 : index
    %10 = vector.load %arg3[%c0_11, %c0_12] : memref<8x256xf32, #tpu.memory_space<vmem>>, vector<8x256xf32>
    %11 = arith.negf %9 : vector<8x256xf32>
    %12 = math.exp %11 : vector<8x256xf32>
    %cst = arith.constant 1.000000e+00 : f32
    %13 = vector.broadcast %cst : f32 to vector<8x256xf32>
    %14 = arith.addf %13, %12 : vector<8x256xf32>
    %15 = arith.divf %13, %14 : vector<8x256xf32>
    %16 = arith.mulf %15, %10 : vector<8x256xf32>
    %17 = arith.addf %4, %16 : vector<8x256xf32>
    %18 = arith.addf %6, %15 : vector<8x256xf32>
    %19 = arith.addf %8, %10 : vector<8x256xf32>
    %c0_13 = arith.constant 0 : index
    %c0_14 = arith.constant 0 : index
    %c0_15 = arith.constant 0 : index
    %20 = vector.load %arg4[%c0_13, %c0_14, %c0_15] : memref<1x8x256xf32, #tpu.memory_space<vmem>>, vector<1x8x256xf32>
    %21 = vector.shape_cast %20 : vector<1x8x256xf32> to vector<8x256xf32>
    %22 = vector.shape_cast %17 : vector<8x256xf32> to vector<1x8x256xf32>
    tpu.vector_store %arg4[%c0_13, %c0_14, %c0_15], %22 {strides = array<i32>} : memref<1x8x256xf32, #tpu.memory_space<vmem>>, vector<1x8x256xf32>,
    %c0_16 = arith.constant 0 : index
    %c0_17 = arith.constant 0 : index
    %c0_18 = arith.constant 0 : index
    %23 = vector.load %arg5[%c0_16, %c0_17, %c0_18] : memref<1x8x256xf32, #tpu.memory_space<vmem>>, vector<1x8x256xf32>
    %24 = vector.shape_cast %23 : vector<1x8x256xf32> to vector<8x256xf32>
    %25 = vector.shape_cast %18 : vector<8x256xf32> to vector<1x8x256xf32>
    tpu.vector_store %arg5[%c0_16, %c0_17, %c0_18], %25 {strides = array<i32>} : memref<1x8x256xf32, #tpu.memory_space<vmem>>, vector<1x8x256xf32>,
    %c0_19 = arith.constant 0 : index
    %c0_20 = arith.constant 0 : index
    %c0_21 = arith.constant 0 : index
    %26 = vector.load %arg6[%c0_19, %c0_20, %c0_21] : memref<1x8x256xf32, #tpu.memory_space<vmem>>, vector<1x8x256xf32>
    %27 = vector.shape_cast %26 : vector<1x8x256xf32> to vector<8x256xf32>
    %28 = vector.shape_cast %19 : vector<8x256xf32> to vector<1x8x256xf32>
    tpu.vector_store %arg6[%c0_19, %c0_20, %c0_21], %28 {strides = array<i32>} : memref<1x8x256xf32, #tpu.memory_space<vmem>>, vector<1x8x256xf32>,
    return
  }
  func.func @transform_0(%arg0: i32, %arg1: i32) -> (i32, i32) {
    %c1_i32 = arith.constant 1 : i32
    %0 = arith.muli %arg0, %c1_i32 : i32
    %1 = arith.addi %0, %arg1 : i32
    %c0_i32 = arith.constant 0 : i32
    %c0_i32_0 = arith.constant 0 : i32
    return %c0_i32, %1 : i32, i32
  }
  func.func @transform_1(%arg0: i32, %arg1: i32) -> (i32, i32) {
    %c1_i32 = arith.constant 1 : i32
    %0 = arith.muli %arg0, %c1_i32 : i32
    %1 = arith.addi %0, %arg1 : i32
    %c0_i32 = arith.constant 0 : i32
    %c0_i32_0 = arith.constant 0 : i32
    return %c0_i32, %1 : i32, i32
  }
  func.func @transform_2(%arg0: i32, %arg1: i32) -> (i32, i32, i32) {
    %c0_i32 = arith.constant 0 : i32
    %c0_i32_0 = arith.constant 0 : i32
    %c0_i32_1 = arith.constant 0 : i32
    return %arg0, %c0_i32, %c0_i32_0 : i32, i32, i32
  }
  func.func @transform_3(%arg0: i32, %arg1: i32) -> (i32, i32, i32) {
    %c0_i32 = arith.constant 0 : i32
    %c0_i32_0 = arith.constant 0 : i32
    %c0_i32_1 = arith.constant 0 : i32
    return %arg0, %c0_i32, %c0_i32_0 : i32, i32, i32
  }
  func.func @transform_4(%arg0: i32, %arg1: i32) -> (i32, i32, i32) {
    %c0_i32 = arith.constant 0 : i32
    %c0_i32_0 = arith.constant 0 : i32
    %c0_i32_1 = arith.constant 0 : i32
    return %arg0, %c0_i32, %c0_i32_0 : i32, i32, i32
  }
}

</mosaic_0001>

<bundles_post_ra>
// kernel: tpu_custom_call.1
= control target key start
LH: loop header
LB: loop body
LE: loop exit
PB: predicated region body
PF: predicated region fallthrough
CT: control target
= control target key end

     0   :  { %10 = vsyncpa [#allocation3], 0  ;;  %s379_s0 = inlined_call_operand.hbm [shape: f32[8,256], index: 0, kind: input, shape index: {}]   ;;  %s380_s1 = inlined_call_operand.hbm [shape: f32[8,256], index: 1, kind: input, shape index: {}]   ;;  %s381_s2 = inlined_call_operand.hbm [shape: f32[1,8,256], index: 2, kind: output, shape index: {0}]   ;;  %s382_s3 = inlined_call_operand.hbm [shape: f32[1,8,256], index: 3, kind: output, shape index: {1}]   ;;  %s383_s4 = inlined_call_operand.hbm [shape: f32[1,8,256], index: 4, kind: output, shape index: {2}]  }
   0x1   :  { %11 = vsyncpa [#allocation6], 0 }
   0x2   :  { %12 = vsyncpa [#allocation4], 0 }
   0x3   :  { %13 = vsyncpa [#allocation9], 0  ;;  %s275_s15 = smov [#allocation2]   ;;  %s276_s17 = smov [#allocation5]  }
   0x4   :  { %s24_s16 = sshll.u32 %s275_s15, 4  ;;  %s38_s18 = sshll.u32 %s276_s17, 4  ;;  %s25_s16 = int_to_ptr.vmem [resolvable:$true] %s24_s16  ;;  %s39_s18 = int_to_ptr.vmem [resolvable:$true] %s38_s18 }
   0x5   :  { %s157_s21 = scalar_lea.hbm %s379_s0, 256 }
   0x6   :  { %p158_p0 = scmp.ne.s32.totalorder %s379_s0, %s157_s21  ;;  %p161_p1 = scmp.lt.u32.totalorder %s157_s21, %s379_s0 }
   0x8   :  { %p163_p2 = pnand %p161_p1, %p158_p0 }
   0xa   :  { %166 = shalt.err (!%p163_p2)
}
   0xb   :  { %s167_s26 = scalar_lea.vmem %s25_s16, 256  ;;  %p172_p4 = scmp.lt.s32.totalorder %s25_s16, %s25_s16 }
   0xc   :  { %p168_p3 = scmp.ne.s32.totalorder %s25_s16, %s167_s26  ;;  %p173_p5 = scmp.lt.s32.totalorder %s167_s26, %s167_s26 }
   0xe   :  { %p174_p6 = por %p173_p5, %p172_p4 }
  0x10   :  { %p175_p7 = pnand %p174_p6, %p168_p3 }
  0x12   :  { %178 = shalt.err (!%p175_p7)
}
  0x13   :  { %27 = dma.hbm_to_vmem [thread:$0]  %s379_s0, 256, %s25_s16, [#allocation3]  }
  0x14   :  { %s179_s5 = scalar_lea.hbm %s380_s1, 256 }
  0x15   :  { %p180_p8 = scmp.ne.s32.totalorder %s380_s1, %s179_s5  ;;  %p183_p9 = scmp.lt.u32.totalorder %s179_s5, %s380_s1 }
  0x17   :  { %p185_p10 = pnand %p183_p9, %p180_p8 }
  0x19   :  { %188 = shalt.err (!%p185_p10)
}
  0x1a   :  { %s189_s10 = scalar_lea.vmem %s39_s18, 256  ;;  %p194_p12 = scmp.lt.s32.totalorder %s39_s18, %s39_s18 }
  0x1b   :  { %p190_p11 = scmp.ne.s32.totalorder %s39_s18, %s189_s10  ;;  %p195_p13 = scmp.lt.s32.totalorder %s189_s10, %s189_s10 }
  0x1d   :  { %p196_p0 = por %p195_p13, %p194_p12 }
  0x1f   :  { %p197_p1 = pnand %p196_p0, %p190_p11 }
  0x21   :  { %200 = shalt.err (!%p197_p1)
}
  0x22   :  { %41 = dma.hbm_to_vmem [thread:$0]  %s380_s1, 256, %s39_s18, [#allocation6]  }
  0x23   :  { %267 = dma.done.wait [#allocation3], 256  }
  0x24   :  { %268 = vsyncadd [#allocation3], 4294967040 }
  0x25   :  { %269 = dma.done.wait [#allocation6], 256  }
  0x26   :  { %270 = vsyncadd [#allocation6], 4294967040  ;;  %v68_v0 = vld [vmem:[#allocation2] sm:$0xff]  ;;  %v69_v1 = vld [vmem:[#allocation2 + $0x8] sm:$0xff]  ;;  %s277_s1 = smov [#allocation8]   ;;  %s278_s13 = smov [#allocation10]  }
  0x27   :  { %v70_v2 = vld [vmem:[#allocation5] sm:$0xff]  ;;  %v141_v3 = vmul.f32 -1.442695, %v68_v0  ;;  %v142_v4 = vmul.f32 -1.442695, %v69_v1  ;;  %v71_v5 = vld [vmem:[#allocation5 + $0x8] sm:$0xff] }
  0x28   :  { %96 = vst [vmem:[#allocation10] sm:$0xff] %v70_v2  ;;  %97 = vst [vmem:[#allocation10 + $0x8] sm:$0xff] %v71_v5  ;;  %s114_s12 = sshll.u32 %s277_s1, 4  ;;  %s124_s14 = sshll.u32 %s278_s13, 4  ;;  %s115_s12 = int_to_ptr.vmem [resolvable:$true] %s114_s12  ;;  %s329_s14 = int_to_ptr.vmem [resolvable:$true] %s124_s14 }
  0x29   :  { %149 = vpow2.f32 %v141_v3  ;;  %s279_s15 = smov [#allocation7]   ;;  %s201_s17 = scalar_lea.vmem %s115_s12, 256 }
  0x2a   :  { %151 = vpow2.f32 %v142_v4  ;;  %s104_s16 = sshll.u32 %s279_s15, 4  ;;  %p202_p2 = scmp.ne.s32.totalorder %s115_s12, %s201_s17  ;;  %s331_s16 = int_to_ptr.vmem [resolvable:$true] %s104_s16 }
  0x2b   :  { %p206_p3 = scmp.lt.s32.totalorder %s115_s12, %s115_s12  ;;  %p207_p4 = scmp.lt.s32.totalorder %s201_s17, %s201_s17 }
  0x2d   :  { %p208_p5 = por %p207_p4, %p206_p3 }
  0x2f   :  { %p209_p6 = pnand %p208_p5, %p202_p2 }
  0x33   :  { %v150_v6 = vpop.eup %149 }
  0x34   :  { %v152_v7 = vpop.eup %151  ;;  %v78_v8 = vadd.f32 1.0, %v150_v6 }
  0x35   :  { %v79_v9 = vadd.f32 1.0, %v152_v7 }
  0x36   :  { %153 = vrcp.f32 %v78_v8 }
  0x37   :  { %155 = vrcp.f32 %v79_v9 }
  0x40   :  { %v154_v10 = vpop.eup %153 }
  0x41   :  { %v156_v11 = vpop.eup %155  ;;  %v84_v12 = vmul.f32 %v154_v10, %v70_v2  ;;  %94 = vst [vmem:[#allocation8] sm:$0xff] %v154_v10 }
  0x42   :  { %v85_v13 = vmul.f32 %v156_v11, %v71_v5  ;;  %95 = vst [vmem:[#allocation8 + $0x8] sm:$0xff] %v156_v11 }
  0x43   :  { %92 = vst [vmem:[#allocation7] sm:$0xff] %v84_v12 }
  0x44   :  { %212 = shalt.err (!%p209_p6)
}
  0x45   :  { %s213_s20 = scalar_lea.hbm %s382_s3, 256 }
  0x46   :  { %p214_p7 = scmp.ne.s32.totalorder %s382_s3, %s213_s20  ;;  %p217_p8 = scmp.lt.u32.totalorder %s213_s20, %s382_s3 }
  0x48   :  { %p219_p9 = pnand %p217_p8, %p214_p7 }
  0x4a   :  { %222 = shalt.err (!%p219_p9)
}
  0x4b   :  { %117 = dma.vmem_to_hbm [thread:$0]  %s115_s12, 256, %s382_s3, [#allocation9]   ;;  %93 = vst [vmem:[#allocation7 + $0x8] sm:$0xff] %v85_v13 }
  0x4c   :  { %s223_s27 = scalar_lea.vmem %s329_s14, 256  ;;  %p228_p11 = scmp.lt.s32.totalorder %s329_s14, %s329_s14 }
  0x4d   :  { %p224_p10 = scmp.ne.s32.totalorder %s329_s14, %s223_s27  ;;  %p229_p12 = scmp.lt.s32.totalorder %s223_s27, %s223_s27 }
  0x4f   :  { %p230_p13 = por %p229_p12, %p228_p11 }
  0x51   :  { %p231_p0 = pnand %p230_p13, %p224_p10 }
  0x53   :  { %234 = shalt.err (!%p231_p0)
}
  0x54   :  { %s235_s30 = scalar_lea.hbm %s383_s4, 256 }
  0x55   :  { %p236_p1 = scmp.ne.s32.totalorder %s383_s4, %s235_s30  ;;  %p239_p2 = scmp.lt.u32.totalorder %s235_s30, %s383_s4 }
  0x57   :  { %p241_p3 = pnand %p239_p2, %p236_p1 }
  0x59   :  { %244 = shalt.err (!%p241_p3)
}
  0x5a   :  { %127 = dma.vmem_to_hbm [thread:$0]  %s329_s14, 256, %s383_s4, [#allocation9]  }
  0x5b   :  { %s245_s10 = scalar_lea.vmem %s331_s16, 256  ;;  %p250_p5 = scmp.lt.s32.totalorder %s331_s16, %s331_s16 }
  0x5c   :  { %p246_p4 = scmp.ne.s32.totalorder %s331_s16, %s245_s10  ;;  %p251_p6 = scmp.lt.s32.totalorder %s245_s10, %s245_s10 }
  0x5e   :  { %p252_p7 = por %p251_p6, %p250_p5 }
  0x60   :  { %p253_p8 = pnand %p252_p7, %p246_p4 }
  0x62   :  { %256 = shalt.err (!%p253_p8)
}
  0x63   :  { %s257_s1 = scalar_lea.hbm %s381_s2, 256 }
  0x64   :  { %p258_p9 = scmp.ne.s32.totalorder %s381_s2, %s257_s1  ;;  %p261_p10 = scmp.lt.u32.totalorder %s257_s1, %s381_s2 }
  0x66   :  { %p263_p11 = pnand %p261_p10, %p258_p9 }
  0x68   :  { %266 = shalt.err (!%p263_p11)
}
  0x69   :  { %107 = dma.vmem_to_hbm [thread:$0]  %s331_s16, 256, %s381_s2, [#allocation4]  }
  0x6a   :  { %271 = dma.done.wait [#allocation4], 256  }
  0x6b   :  { %272 = vsyncadd [#allocation4], 4294967040 }
  0x6c   :  { %273 = dma.done.wait [#allocation9], 512  }
  0x6d   :  { %274 = vsyncadd [#allocation9], 4294966784 }
  0x6e   :  { %137 = vsyncpa [#allocation3], 1 }
  0x6f   :  { %138 = vsyncpa [#allocation6], 1 }
  0x70   :  { %139 = vsyncpa [#allocation4], 1 }
  0x71   :  { %140 = vsyncpa [#allocation9], 1 }

</bundles_post_ra>
